<compile_context>
chip_gen: v6e
topology: v6e:2x2x1
jax: 0.10.0
libtpu: 0.0.40
codegen_flags: <defaults>
</compile_context>

<pallas_src>
import jax
import jax.numpy as jnp
from jax.experimental import pallas as pl
from jax.experimental.pallas import tpu as pltpu


_DEFAULT_TILE_B = 1024  # rows per grid step; multiple of 8, a few-hundred-KiB tile
                        # (comfortably inside v7x's 64 MiB VMEM with double-buffering)


def _round_up(n, m):
    return ((n + m - 1) // m) * m


def _critic_kernel(x_ref, a_ref, w1x_ref, w1a_ref, b1_ref, w2_ref, b2_ref,
                   w3_ref, b3_ref, out_ref):
    # Layer 1: concat([x, a]) @ W1  ==  x @ W1[:obs] + a @ W1[obs:]   (no HBM concat)
    h1 = (jnp.dot(x_ref[...], w1x_ref[...], preferred_element_type=jnp.float32)
          + jnp.dot(a_ref[...], w1a_ref[...], preferred_element_type=jnp.float32)
          + b1_ref[...])
    h1 = jnp.maximum(h1, 0.0)
    # Layer 2 + ReLU (MXU matmul, f32 accumulate)
    h2 = jnp.dot(h1, w2_ref[...], preferred_element_type=jnp.float32) + b2_ref[...]
    h2 = jnp.maximum(h2, 0.0)
    # Layer 3 (64 -> 1): VPU multiply + lane reduce instead of an N=1 MXU matmul.
    q = jnp.sum(h2 * w3_ref[...], axis=-1, keepdims=True) + b3_ref[0, 0]
    out_ref[...] = q.astype(out_ref.dtype)


def critic_forward(x, a, params, *, tile_b=None):
    """x: (B, obs_dim), a: (B, act_dim). Returns q: (B, 1) float32."""
    w1, b1, w2, b2, w3, b3 = params
    B, obs_dim = x.shape
    act_dim = a.shape[1]
    hidden = w1.shape[1]

    # Parameter prep (cheap XLA glue on tiny tensors, done once per call):
    w1x = w1[:obs_dim]            # (obs_dim, 64)
    w1a = w1[obs_dim:]            # (act_dim, 64)
    w3_row = w3.reshape(1, hidden)  # (1, 64) for the VPU reduction
    b3_s = b3.reshape(1, 1)         # scalar bias -> SMEM

    # Batch tiling (tile must be a multiple of 8 sublanes).
    if tile_b is None:
        tile_b = min(_DEFAULT_TILE_B, _round_up(B, 8))
    tile_b = _round_up(tile_b, 8)
    b_padded = _round_up(B, tile_b)
    if b_padded != B:
        pad = b_padded - B
        x = jnp.pad(x, ((0, pad), (0, 0)))
        a = jnp.pad(a, ((0, pad), (0, 0)))

    grid = (b_padded // tile_b,)

    def resident(arr):
        # Whole small parameter stays VMEM-resident across every grid step.
        return pl.BlockSpec(arr.shape, lambda i: (0, 0))

    out = pl.pallas_call(
        _critic_kernel,
        out_shape=jax.ShapeDtypeStruct((b_padded, 1), jnp.float32),
        grid=grid,
        in_specs=[
            pl.BlockSpec((tile_b, obs_dim), lambda i: (i, 0)),   # x tile
            pl.BlockSpec((tile_b, act_dim), lambda i: (i, 0)),   # a tile
            resident(w1x), resident(w1a), resident(b1),
            resident(w2), resident(b2), resident(w3_row),
            pl.BlockSpec(memory_space=pltpu.MemorySpace.SMEM),   # b3 scalar in SMEM
        ],
        out_specs=pl.BlockSpec((tile_b, 1), lambda i: (i, 0)),
        compiler_params=pltpu.CompilerParams(
            dimension_semantics=("parallel",)),                  # shard batch over TCs (v7x)
    )(x, a, w1x, w1a, b1, w2, b2, w3_row, b3_s)

    return out[:B]
    # TODO(synk): optional bf16 activation cast (2x HBM traffic reduction) left out
    # to keep exact f32 parity with the PyTorch reference / 1e-5 self-test tolerance.


def init_critic_params(key, obs_dim, act_dim):
    """Deterministic init mirroring nn.Linear defaults (uniform +-1/sqrt(fan_in)).
    Weights are stored transposed: (in_features, out_features)."""
    dims = [(obs_dim + act_dim, 64), (64, 64), (64, 1)]
    params = []
    for (fan_in, fan_out) in dims:
        key, kw, kb = jax.random.split(key, 3)
        bound = 1.0 / jnp.sqrt(fan_in)
        w = jax.random.uniform(kw, (fan_in, fan_out), jnp.float32, -bound, bound)
        b = jax.random.uniform(kb, (1, fan_out), jnp.float32, -bound, bound)
        params += [w, b]
    return tuple(params)


def _ref_forward(x, a, params):
    w1, b1, w2, b2, w3, b3 = params
    h = jnp.concatenate([x, a], axis=1)
    h = jnp.maximum(h @ w1 + b1, 0.0)
    h = jnp.maximum(h @ w2 + b2, 0.0)
    return h @ w3 + b3


if __name__ == "__main__":
    obs_dim, act_dim, batch = 12, 4, 10   # batch not a multiple of 8 -> exercises padding

    key = jax.random.PRNGKey(0)
    kx, ka, kp = jax.random.split(key, 3)
    x = jax.random.normal(kx, (batch, obs_dim), jnp.float32)
    a = jax.random.normal(ka, (batch, act_dim), jnp.float32)
    params = init_critic_params(kp, obs_dim, act_dim)

    q = critic_forward(x, a, params)
    q = jax.block_until_ready(q)

    q_ref = _ref_forward(x, a, params)
    assert q.shape == (batch, 1)
    assert jnp.allclose(q, q_ref, atol=1e-5, rtol=1e-5)

    print("KERNEL_OK")
</pallas_src>

<mosaic_0001>
module attributes {stable_mosaic.version = 11 : i64} {
  func.func @_critic_kernel(%arg0: i32, %arg1: memref<16x12xf32, #tpu.memory_space<vmem>>, %arg2: memref<16x4xf32, #tpu.memory_space<vmem>>, %arg3: memref<12x64xf32, #tpu.memory_space<vmem>>, %arg4: memref<4x64xf32, #tpu.memory_space<vmem>>, %arg5: memref<1x64xf32, #tpu.memory_space<vmem>>, %arg6: memref<64x64xf32, #tpu.memory_space<vmem>>, %arg7: memref<1x64xf32, #tpu.memory_space<vmem>>, %arg8: memref<1x64xf32, #tpu.memory_space<vmem>>, %arg9: memref<1x1xf32, #tpu.memory_space<smem>>, %arg10: memref<16x1xf32, #tpu.memory_space<vmem>>) attributes {dimension_semantics = [#tpu.dimension_semantics<parallel>], iteration_bounds = array<i64: 1>, scalar_prefetch = 0 : i64, scratch_operands = 0 : i64, tpu.core_type = #tpu.core_type<tc>, window_params = [{transform_indices = @transform_0, window_bounds = array<i64: 16, 12>}, {transform_indices = @transform_1, window_bounds = array<i64: 16, 4>}, {pipeline_mode = #tpu.pipeline_mode<synchronous>, transform_indices = @transform_2, window_bounds = array<i64: 12, 64>}, {pipeline_mode = #tpu.pipeline_mode<synchronous>, transform_indices = @transform_3, window_bounds = array<i64: 4, 64>}, {pipeline_mode = #tpu.pipeline_mode<synchronous>, transform_indices = @transform_4, window_bounds = array<i64: 1, 64>}, {pipeline_mode = #tpu.pipeline_mode<synchronous>, transform_indices = @transform_5, window_bounds = array<i64: 64, 64>}, {pipeline_mode = #tpu.pipeline_mode<synchronous>, transform_indices = @transform_6, window_bounds = array<i64: 1, 64>}, {pipeline_mode = #tpu.pipeline_mode<synchronous>, transform_indices = @transform_7, window_bounds = array<i64: 1, 64>}, {transform_indices = @transform_8, window_bounds = array<i64: 1, 1>}, {transform_indices = @transform_9, window_bounds = array<i64: 16, 1>}]} {
    %c0 = arith.constant 0 : index
    %c0_0 = arith.constant 0 : index
    %0 = vector.load %arg1[%c0, %c0_0] : memref<16x12xf32, #tpu.memory_space<vmem>>, vector<16x12xf32>
    %c0_1 = arith.constant 0 : index
    %c0_2 = arith.constant 0 : index
    %1 = vector.load %arg3[%c0_1, %c0_2] : memref<12x64xf32, #tpu.memory_space<vmem>>, vector<12x64xf32>
    %cst = arith.constant dense<0.000000e+00> : vector<16x64xf32>
    %2 = tpu.matmul %0, %1, %cst {dimension_numbers = #tpu.dot_dimension_numbers<[1], [0], [0], [1], [0, 0, 1, 1], [], []>} : vector<16x12xf32>, vector<12x64xf32>, vector<16x64xf32> -> vector<16x64xf32>
    %c0_3 = arith.constant 0 : index
    %c0_4 = arith.constant 0 : index
    %3 = vector.load %arg2[%c0_3, %c0_4] : memref<16x4xf32, #tpu.memory_space<vmem>>, vector<16x4xf32>
    %c0_5 = arith.constant 0 : index
    %c0_6 = arith.constant 0 : index
    %4 = vector.load %arg4[%c0_5, %c0_6] : memref<4x64xf32, #tpu.memory_space<vmem>>, vector<4x64xf32>
    %cst_7 = arith.constant dense<0.000000e+00> : vector<16x64xf32>
    %5 = tpu.matmul %3, %4, %cst_7 {dimension_numbers = #tpu.dot_dimension_numbers<[1], [0], [0], [1], [0, 0, 1, 1], [], []>} : vector<16x4xf32>, vector<4x64xf32>, vector<16x64xf32> -> vector<16x64xf32>
    %6 = arith.addf %2, %5 : vector<16x64xf32>
    %c0_8 = arith.constant 0 : index
    %c0_9 = arith.constant 0 : index
    %7 = vector.load %arg5[%c0_8, %c0_9] : memref<1x64xf32, #tpu.memory_space<vmem>>, vector<1x64xf32>
    %8 = vector.broadcast %7 : vector<1x64xf32> to vector<16x64xf32>
    %9 = arith.addf %6, %8 : vector<16x64xf32>
    %cst_10 = arith.constant 0.000000e+00 : f32
    %10 = vector.broadcast %cst_10 : f32 to vector<16x64xf32>
    %11 = arith.maximumf %9, %10 : vector<16x64xf32>
    %c0_11 = arith.constant 0 : index
    %c0_12 = arith.constant 0 : index
    %12 = vector.load %arg6[%c0_11, %c0_12] : memref<64x64xf32, #tpu.memory_space<vmem>>, vector<64x64xf32>
    %cst_13 = arith.constant dense<0.000000e+00> : vector<16x64xf32>
    %13 = tpu.matmul %11, %12, %cst_13 {dimension_numbers = #tpu.dot_dimension_numbers<[1], [0], [0], [1], [0, 0, 1, 1], [], []>} : vector<16x64xf32>, vector<64x64xf32>, vector<16x64xf32> -> vector<16x64xf32>
    %c0_14 = arith.constant 0 : index
    %c0_15 = arith.constant 0 : index
    %14 = vector.load %arg7[%c0_14, %c0_15] : memref<1x64xf32, #tpu.memory_space<vmem>>, vector<1x64xf32>
    %15 = vector.broadcast %14 : vector<1x64xf32> to vector<16x64xf32>
    %16 = arith.addf %13, %15 : vector<16x64xf32>
    %cst_16 = arith.constant 0.000000e+00 : f32
    %17 = vector.broadcast %cst_16 : f32 to vector<16x64xf32>
    %18 = arith.maximumf %16, %17 : vector<16x64xf32>
    %c0_17 = arith.constant 0 : index
    %c0_18 = arith.constant 0 : index
    %19 = vector.load %arg8[%c0_17, %c0_18] : memref<1x64xf32, #tpu.memory_space<vmem>>, vector<1x64xf32>
    %20 = vector.broadcast %19 : vector<1x64xf32> to vector<16x64xf32>
    %21 = arith.mulf %18, %20 : vector<16x64xf32>
    %cst_19 = arith.constant dense<0.000000e+00> : vector<16xf32>
    %22 = vector.multi_reduction <add>, %21, %cst_19 [1] : vector<16x64xf32> to vector<16xf32>
    %23 = vector.shape_cast %22 : vector<16xf32> to vector<16x1xf32>
    %c0_20 = arith.constant 0 : index
    %c0_21 = arith.constant 0 : index
    %24 = memref.load %arg9[%c0_20, %c0_21] : memref<1x1xf32, #tpu.memory_space<smem>>
    %25 = vector.broadcast %24 : f32 to vector<16x1xf32>
    %26 = arith.addf %23, %25 : vector<16x1xf32>
    %c0_22 = arith.constant 0 : index
    %c0_23 = arith.constant 0 : index
    %27 = vector.load %arg10[%c0_22, %c0_23] : memref<16x1xf32, #tpu.memory_space<vmem>>, vector<16x1xf32>
    tpu.vector_store %arg10[%c0_22, %c0_23], %26 {strides = array<i32>} : memref<16x1xf32, #tpu.memory_space<vmem>>, vector<16x1xf32>,
    return
  }
  func.func @transform_0(%arg0: i32) -> (i32, i32) {
    %c0_i32 = arith.constant 0 : i32
    %c0_i32_0 = arith.constant 0 : i32
    return %arg0, %c0_i32 : i32, i32
  }
  func.func @transform_1(%arg0: i32) -> (i32, i32) {
    %c0_i32 = arith.constant 0 : i32
    %c0_i32_0 = arith.constant 0 : i32
    return %arg0, %c0_i32 : i32, i32
  }
  func.func @transform_2(%arg0: i32) -> (i32, i32) {
    %c0_i32 = arith.constant 0 : i32
    %c0_i32_0 = arith.constant 0 : i32
    %c0_i32_1 = arith.constant 0 : i32
    return %c0_i32, %c0_i32_0 : i32, i32
  }
  func.func @transform_3(%arg0: i32) -> (i32, i32) {
    %c0_i32 = arith.constant 0 : i32
    %c0_i32_0 = arith.constant 0 : i32
    %c0_i32_1 = arith.constant 0 : i32
    return %c0_i32, %c0_i32_0 : i32, i32
  }
  func.func @transform_4(%arg0: i32) -> (i32, i32) {
    %c0_i32 = arith.constant 0 : i32
    %c0_i32_0 = arith.constant 0 : i32
    %c0_i32_1 = arith.constant 0 : i32
    return %c0_i32, %c0_i32_0 : i32, i32
  }
  func.func @transform_5(%arg0: i32) -> (i32, i32) {
    %c0_i32 = arith.constant 0 : i32
    %c0_i32_0 = arith.constant 0 : i32
    %c0_i32_1 = arith.constant 0 : i32
    return %c0_i32, %c0_i32_0 : i32, i32
  }
  func.func @transform_6(%arg0: i32) -> (i32, i32) {
    %c0_i32 = arith.constant 0 : i32
    %c0_i32_0 = arith.constant 0 : i32
    %c0_i32_1 = arith.constant 0 : i32
    return %c0_i32, %c0_i32_0 : i32, i32
  }
  func.func @transform_7(%arg0: i32) -> (i32, i32) {
    %c0_i32 = arith.constant 0 : i32
    %c0_i32_0 = arith.constant 0 : i32
    %c0_i32_1 = arith.constant 0 : i32
    return %c0_i32, %c0_i32_0 : i32, i32
  }
  func.func @transform_8(%arg0: i32) -> (i32, i32) {
    %c0_i32 = arith.constant 0 : i32
    %c0_i32_0 = arith.constant 0 : i32
    %c0_i32_1 = arith.constant 0 : i32
    return %c0_i32, %c0_i32_0 : i32, i32
  }
  func.func @transform_9(%arg0: i32) -> (i32, i32) {
    %c0_i32 = arith.constant 0 : i32
    %c0_i32_0 = arith.constant 0 : i32
    return %arg0, %c0_i32 : i32, i32
  }
}

</mosaic_0001>

<bundles_post_ra>
// kernel: tpu_custom_call.1
= control target key start
LH: loop header
LB: loop body
LE: loop exit
PB: predicated region body
PF: predicated region fallthrough
CT: control target
= control target key end

     0   :  { %15 = vsyncpa [#allocation4], 0  ;;  %s581_s0 = inlined_call_operand.vmem [shape: f32[16,12], index: 0, kind: input, shape index: {}]   ;;  %s582_s1 = inlined_call_operand.vmem [shape: f32[16,4], index: 1, kind: input, shape index: {}]   ;;  %s583_s2 = inlined_call_operand.hbm [shape: f32[12,64], index: 2, kind: input, shape index: {}]   ;;  %s584_s3 = inlined_call_operand.vmem [shape: f32[4,64], index: 3, kind: input, shape index: {}]   ;;  %s585_s4 = inlined_call_operand.vmem [shape: f32[1,64], index: 4, kind: input, shape index: {}]   ;;  %s586_s5 = inlined_call_operand.hbm [shape: f32[64,64], index: 5, kind: input, shape index: {}]   ;;  %s587_s6 = inlined_call_operand.vmem [shape: f32[1,64], index: 6, kind: input, shape index: {}]   ;;  %s588_s7 = inlined_call_operand.vmem [shape: f32[1,64], index: 7, kind: input, shape index: {}]   ;;  %s589_s8 = inlined_call_operand.<no memory space> [shape: f32[1,1], index: 8, kind: input, shape index: {}]   ;;  %s590_s9 = inlined_call_operand.vmem [shape: f32[16,1], index: 9, kind: output, shape index: {}]  }
   0x1   :  { %16 = vsyncpa [#allocation6], 0  ;;  %s484_s30 = smov [#allocation3]  }
   0x2   :  { %s26_s10 = sshll.u32 %s484_s30, 4  ;;  %s27_s10 = int_to_ptr.vmem [resolvable:$true] %s26_s10 }
   0x3   :  { %s448_s11 = scalar_lea.vmem %s27_s10, 256  ;;  %p453_p1 = scmp.lt.s32.totalorder %s27_s10, %s27_s10 }
   0x4   :  { %p449_p0 = scmp.ne.s32.totalorder %s27_s10, %s448_s11  ;;  %p454_p2 = scmp.lt.s32.totalorder %s448_s11, %s448_s11 }
   0x6   :  { %p455_p3 = por %p454_p2, %p453_p1 }
   0x8   :  { %p456_p4 = pnand %p455_p3, %p449_p0 }
   0xa   :  { %459 = shalt.err (!%p456_p4)
}
   0xb   :  { %s485_s12 = smov 128   ;;  %s486_s13 = smov 8  }
   0xc   :  { %32 = dma.hbm_to_vmem [thread:$0]  %s583_s2, 256, %s27_s10, [#allocation4], %s485_s12, %s485_s12, %s486_s13  }
   0xd   :  { %s487_s16 = smov [#allocation5]  }
   0xe   :  { %s42_s17 = sshll.u32 %s487_s16, 4  ;;  %s43_s17 = int_to_ptr.vmem [resolvable:$true] %s42_s17 }
   0xf   :  { %s468_s18 = scalar_lea.vmem %s43_s17, 1024  ;;  %p473_p6 = scmp.lt.s32.totalorder %s43_s17, %s43_s17 }
  0x10   :  { %p469_p5 = scmp.ne.s32.totalorder %s43_s17, %s468_s18  ;;  %p474_p7 = scmp.lt.s32.totalorder %s468_s18, %s468_s18 }
  0x12   :  { %p475_p8 = por %p474_p7, %p473_p6 }
  0x14   :  { %p476_p9 = pnand %p475_p8, %p469_p5 }
  0x16   :  { %479 = shalt.err (!%p476_p9)
}
  0x17   :  { %48 = dma.hbm_to_vmem [thread:$0]  %s586_s5, 1024, %s43_s17, [#allocation6], %s485_s12, %s485_s12, %s486_s13  }
  0x18   :  { %480 = dma.done.wait [#allocation4], 256  }
  0x19   :  { %481 = vsyncadd [#allocation4], 4294967040 }
  0x1a   :  { %482 = dma.done.wait [#allocation6], 1024  }
  0x1b   :  { %483 = vsyncadd [#allocation6], 4294966272  ;;  %vm75_vm0 = vcmask 1043456   ;;  %vm68_vm1 = vcmask 31744   ;;  %v67_v0 = vld [vmem:[%s584_s3] sm:$0xf]  ;;  %v365_v38 = vstv %s589_s8 }
  0x1c   :  { %v65_v1 = vld [vmem:[%s582_s1] sm:$0xff]  ;;  %v66_v2 = vld [vmem:[%s582_s1 + $0x8] sm:$0xff]  ;;  %405 = vmatprep.subr.msk.mxu1 %vm75_vm0, %v67_v0  ;;  %vm154_vm2 = vcmask 97280   ;;  %v255_v9 = vld [vmem:[#allocation5 + $0x28] sm:$0xff]  ;;  %vm265_vm3 = vcmask 523264   ;;  %vm368_vm4 = vcmask 7168  }
  0x1d   :  { %407 = vmatprep.mubr.msk.f32.mxu1 %vm68_vm1, %v65_v1  ;;  %v64_v3 = vld [vmem:[#allocation3 + $0x8] sm:$0xf]  ;;  %v61_v4 = vld [vmem:[%s581_s0] sm:$0xff]  ;;  %406 = vmatpush3.msk.msra.mxu1 %vm75_vm0, %v67_v0  ;;  %v254_v10 = vld [vmem:[#allocation5 + $0x20] sm:$0xff] }
  0x1e   :  { %v63_v5 = vld [vmem:[#allocation3] sm:$0xff]  ;;  %v257_v6 = vld [vmem:[#allocation5 + $0x38] sm:$0xff]  ;;  %408 = vmatmul.mubr.msk.f32.vlgmr.msra.gmra.mxu1 %vm68_vm1, %v66_v2  ;;  %410 = vmatprep.subr.msk.mxu1 %vm75_vm0, %v64_v3  ;;  %v251_v13 = vld [vmem:[#allocation5 + $0x8] sm:$0xff] }
  0x1f   :  { %411 = vmatpush3.msk.msra.mxu1 %vm75_vm0, %v64_v3  ;;  %414 = vmatprep.mubr.msk.f32.mxu1 %vm154_vm2, %v61_v4  ;;  %v62_v7 = vld [vmem:[%s581_s0 + $0x8] sm:$0xff]  ;;  %v256_v8 = vld [vmem:[#allocation5 + $0x30] sm:$0xff]  ;;  %v250_v14 = vld [vmem:[#allocation5] sm:$0xff] }
  0x20   :  { %412 = vmatprep.subr.mxu1 %v63_v5  ;;  %417 = vmatprep.subr.mxu0 %v257_v6  ;;  %v253_v11 = vld [vmem:[#allocation5 + $0x18] sm:$0xff]  ;;  %v252_v12 = vld [vmem:[#allocation5 + $0x10] sm:$0xff] }
  0x21   :  { %413 = vmatpush3.msra.mxu1 %v63_v5  ;;  %418 = vmatpush3.msra.mxu0 %v257_v6  ;;  %v383_v19 = vld [vmem:[%s585_s4] ss:$0 sm:$0xff] }
  0x22   :  { %415 = vmatmul.mubr.msk.f32.vlgmr.msra.gmra.mxu1 %vm154_vm2, %v62_v7  ;;  %419 = vmatprep.subr.mxu0 %v256_v8  ;;  %v384_v26 = vld [vmem:[%s587_s6] ss:$0 sm:$0xff] }
  0x23   :  { %420 = vmatpush3.msra.mxu0 %v256_v8  ;;  %v387_v33 = vld [vmem:[%s588_s7] ss:$0 sm:$0xff] }
  0x24   :  { %421 = vmatprep.subr.mxu0 %v255_v9 }
  0x25   :  { %422 = vmatpush3.msra.mxu0 %v255_v9 }
  0x26   :  { %423 = vmatprep.subr.mxu0 %v254_v10 }
  0x27   :  { %424 = vmatpush3.msra.mxu0 %v254_v10 }
  0x28   :  { %425 = vmatprep.subr.mxu0 %v253_v11 }
  0x29   :  { %426 = vmatpush3.msra.mxu0 %v253_v11 }
  0x2a   :  { %427 = vmatprep.subr.mxu0 %v252_v12 }
  0x2b   :  { %428 = vmatpush3.msra.mxu0 %v252_v12 }
  0x2c   :  { %429 = vmatprep.subr.mxu0 %v251_v13 }
  0x2d   :  { %430 = vmatpush3.msra.mxu0 %v251_v13 }
  0x2e   :  { %431 = vmatprep.subr.mxu0 %v250_v14 }
  0x2f   :  { %432 = vmatpush3.msra.mxu0 %v250_v14 }
  0xde   :  { %v409_v15 = vpop.f32.mrf.mxu1 }
  0xe0   :  { %v145_v16 = vpop.f32.mrf.mxu1 }
  0xe2   :  { %v416_v17 = vpop.f32.mrf.mxu1 }
  0xe3   :  { %v236_v18 = vadd.f32 %v416_v17, %v409_v15 }
  0xe4   :  { %v230_v20 = vpop.f32.mrf.mxu1 }
  0xe5   :  { %v231_v21 = vadd.f32 %v230_v20, %v145_v16  ;;  %v247_v22 = vadd.f32 %v383_v19, %v236_v18 }
  0xe7   :  { %v246_v23 = vadd.f32 %v383_v19, %v231_v21  ;;  %v249_v25 = vmax.f32 %v247_v22, 0.0 }
  0xe9   :  { %v248_v24 = vmax.f32 %v246_v23, 0.0 }
  0xeb   :  { %433 = vmatprep.mubr.msk.f32.mxu0 %vm265_vm3, %v248_v24 }
  0xec   :  { %434 = vmatmul.mubr.msk.f32.vlgmr.msra.gmra.mxu0 %vm265_vm3, %v249_v25 }
 0x1ac   :  { %v435_v27 = vpop.f32.mrf.mxu0 }
 0x1ad   :  { %v344_v28 = vadd.f32 %v435_v27, %v384_v26 }
 0x1ae   :  { %v338_v29 = vpop.f32.mrf.mxu0 }
 0x1af   :  { %v339_v30 = vadd.f32 %v384_v26, %v338_v29  ;;  %v348_v31 = vmax.f32 %v344_v28, 0.0 }
 0x1b1   :  { %v347_v32 = vmax.f32 %v339_v30, 0.0  ;;  %v357_v36 = vmul.f32 %v387_v33, %v348_v31 }
 0x1b3   :  { %v356_v34 = vmul.f32 %v387_v33, %v347_v32  ;;  %v361_v37 = vsel %vm265_vm3, %v357_v36, 0.0 }
 0x1b5   :  { %v358_v35 = vsel %vm265_vm3, %v356_v34, 0.0 }
 0x1b6   :  { %359 = vadd.xlane.f32.xlu0 %v358_v35 }
 0x1ba   :  { %362 = vadd.xlane.f32.xlu0 %v361_v37 }
 0x23f   :  { %v360_v39 = vpop.xlane.xlu0 %359 }
 0x240   :  { %v366_v40 = vadd.f32 %v365_v38, %v360_v39 }
 0x242   :  { %369 = vst.msk [vmem:[%s590_s9] sm:$0xff] %vm368_vm4, %v366_v40 }
 0x243   :  { %v363_v41 = vpop.xlane.xlu0 %362 }
 0x244   :  { %v367_v42 = vadd.f32 %v365_v38, %v363_v41 }
 0x246   :  { %370 = vst.msk [vmem:[%s590_s9 + $0x8] sm:$0xff] %vm368_vm4, %v367_v42 }
 0x247   :  { %375 = vsyncpa [#allocation4], 1 }
 0x248   :  { %376 = vsyncpa [#allocation6], 1 }

</bundles_post_ra>
